<compile_context>
chip_gen: v5e
topology: v5e:2x2
jax: 0.10.0
libtpu: 0.0.40
codegen_flags: <defaults>
</compile_context>

<pallas_src>
import jax
import jax.numpy as jnp
from jax import lax
from jax.experimental import pallas as pl
from jax.experimental.pallas import tpu as pltpu

BN_EPS = 1e-3   # yolov5 Conv uses BatchNorm2d(eps=1e-3)
LANE = 128


def _round_up(x, m):
    return (x + m - 1) // m * m


# ----------------------------- Pallas kernels ------------------------------

def _gemm_bn_silu_kernel(x_ref, w_ref, b_ref, o_ref, acc_ref):
    """One (tm, tn) tile of  out = silu(x @ w + b), accumulated over the K grid axis."""
    @pl.when(pl.program_id(2) == 0)
    def _init():
        acc_ref[...] = jnp.zeros_like(acc_ref)

    acc_ref[...] += jnp.dot(x_ref[...], w_ref[...],
                            preferred_element_type=jnp.float32)

    @pl.when(pl.program_id(2) == pl.num_programs(2) - 1)
    def _store():
        y = acc_ref[...] + b_ref[...]
        o_ref[...] = (y * jax.nn.sigmoid(y)).astype(o_ref.dtype)


def _gemm_bn_silu_res_kernel(x_ref, w_ref, b_ref, r_ref, o_ref, acc_ref):
    """out = residual + silu(x @ w + b)  (fused Bottleneck shortcut)."""
    @pl.when(pl.program_id(2) == 0)
    def _init():
        acc_ref[...] = jnp.zeros_like(acc_ref)

    acc_ref[...] += jnp.dot(x_ref[...], w_ref[...],
                            preferred_element_type=jnp.float32)

    @pl.when(pl.program_id(2) == pl.num_programs(2) - 1)
    def _store():
        y = acc_ref[...] + b_ref[...]
        o_ref[...] = (r_ref[...].astype(jnp.float32)
                      + y * jax.nn.sigmoid(y)).astype(o_ref.dtype)


def fused_gemm_bn_silu(patches, w2d, bias, c_out, residual=None):
    """silu(patches @ w2d + bias)[:, :c_out] (+ residual) as a tiled Pallas GEMM.

    patches : (M, K)  float   (cast to bf16 for the MXU)
    w2d     : (K, Cp) bf16    (Cp already padded to a multiple of 128 -> lane-dense stores)
    bias    : (1, Cp) f32
    residual: (M, c_out) f32 or None
    returns : (M, c_out) f32
    """
    M, K = patches.shape
    Cp = w2d.shape[1]

    # ---- tile selection -----------------------------------------------------
    tn = LANE                                   # lane-dense output tiles
    if M <= 512:
        tm = _round_up(max(M, 8), 8)
        Mp = tm
    else:
        tm = 512                                # big M tiles: these GEMMs are mem-bound
        Mp = _round_up(M, tm)
    if K <= 1024:
        tk, Kp = K, K                           # tiny K: single K step, no padding blow-up
    else:
        tk = 512
        Kp = _round_up(K, tk)

    # ---- pad operands so every grid block divides evenly --------------------
    x = patches.astype(jnp.bfloat16)
    if (Mp, Kp) != (M, K):
        x = jnp.pad(x, ((0, Mp - M), (0, Kp - K)))
    w = w2d
    if Kp != K:
        w = jnp.pad(w, ((0, Kp - K), (0, 0)))

    grid = (Mp // tm, Cp // tn, Kp // tk)
    x_spec = pl.BlockSpec((tm, tk), lambda i, j, k: (i, k))
    w_spec = pl.BlockSpec((tk, tn), lambda i, j, k: (k, j))
    b_spec = pl.BlockSpec((1, tn), lambda i, j, k: (0, j))
    o_spec = pl.BlockSpec((tm, tn), lambda i, j, k: (i, j))
    scratch = [pltpu.VMEM((tm, tn), jnp.float32)]
    cparams = pltpu.CompilerParams(
        dimension_semantics=("parallel", "parallel", "arbitrary"))

    if residual is None:
        out = pl.pallas_call(
            _gemm_bn_silu_kernel,
            out_shape=jax.ShapeDtypeStruct((Mp, Cp), jnp.float32),
            grid_spec=pltpu.PrefetchScalarGridSpec(
                num_scalar_prefetch=0, grid=grid,
                in_specs=[x_spec, w_spec, b_spec],
                out_specs=o_spec, scratch_shapes=scratch),
            compiler_params=cparams,
        )(x, w, bias)
    else:
        r = jnp.pad(residual.astype(jnp.float32),
                    ((0, Mp - M), (0, Cp - residual.shape[1])))
        out = pl.pallas_call(
            _gemm_bn_silu_res_kernel,
            out_shape=jax.ShapeDtypeStruct((Mp, Cp), jnp.float32),
            grid_spec=pltpu.PrefetchScalarGridSpec(
                num_scalar_prefetch=0, grid=grid,
                in_specs=[x_spec, w_spec, b_spec,
                          pl.BlockSpec((tm, tn), lambda i, j, k: (i, j))],
                out_specs=o_spec, scratch_shapes=scratch),
            compiler_params=cparams,
        )(x, w, bias, r)

    return out[:M, :c_out]


# ------------------------------ JAX glue ------------------------------------

def _im2col(x_nhwc, k, s, pad):
    """NHWC -> (N*Ho*Wo, k*k*C) bf16 patches. Tap order matches the HWIO weight reshape."""
    # TODO(synk): for large feature maps, stream the k*k taps as a K grid axis
    # (accumulate over shifted windows) instead of materializing im2col in HBM.
    x_nhwc = x_nhwc.astype(jnp.bfloat16)          # halve HBM footprint of patches
    N, H, W, C = x_nhwc.shape
    Ho = (H + 2 * pad - k) // s + 1
    Wo = (W + 2 * pad - k) // s + 1
    xp = jnp.pad(x_nhwc, ((0, 0), (pad, pad), (pad, pad), (0, 0)))
    taps = []
    for dy in range(k):
        for dx in range(k):
            taps.append(lax.slice(
                xp, (0, dy, dx, 0),
                (N, dy + s * (Ho - 1) + 1, dx + s * (Wo - 1) + 1, C),
                (1, s, s, 1)))
    patches = jnp.stack(taps, axis=3)             # (N, Ho, Wo, k*k, C)
    return patches.reshape(N * Ho * Wo, k * k * C), (N, Ho, Wo)


def _init_conv_raw(key, c_in, c_out, k):
    kw, kg, kb, km, kv = jax.random.split(key, 5)
    return dict(
        w=0.1 * jax.random.normal(kw, (c_out, c_in, k, k), jnp.float32),   # OIHW (PyTorch)
        gamma=1.0 + 0.1 * jax.random.normal(kg, (c_out,), jnp.float32),
        beta=0.1 * jax.random.normal(kb, (c_out,), jnp.float32),
        mean=0.1 * jax.random.normal(km, (c_out,), jnp.float32),
        var=jnp.abs(jax.random.normal(kv, (c_out,), jnp.float32)) + 0.5,
        k=k,
    )


def _fold_bn(p):
    scale = p["gamma"] / jnp.sqrt(p["var"] + BN_EPS)
    wf = p["w"] * scale[:, None, None, None]      # folded OIHW weight
    bf = p["beta"] - p["mean"] * scale
    return wf, bf


def _prep_w2d(w2d, bf, k):
    """Pad output channels to a lane multiple, cast weight to bf16 (done once)."""
    K, C = w2d.shape
    Cp = _round_up(C, LANE)
    w2d = jnp.pad(w2d, ((0, 0), (0, Cp - C))).astype(jnp.bfloat16)
    bias = jnp.pad(bf.reshape(1, C), ((0, 0), (0, Cp - C))).astype(jnp.float32)
    return dict(w=w2d, b=bias, k=k, c_out=C)


def _prep_conv(p):
    """Fold BN into the conv weight once, pre-transpose to (K, Cp), pad, cast bf16."""
    wf, bf = _fold_bn(p)
    c_out, c_in, k, _ = wf.shape
    w2d = jnp.transpose(wf, (2, 3, 1, 0)).reshape(k * k * c_in, c_out)   # tap order = im2col
    return _prep_w2d(w2d, bf, k)


def conv_bn_silu(x_nhwc, cp, s=1, residual=None):
    """Conv2d(k, s, pad=k//2, bias=False) + BatchNorm(folded) + SiLU via Pallas GEMM."""
    k = cp["k"]
    N, H, W, _ = x_nhwc.shape
    if k == 1 and s == 1:
        patches = x_nhwc.reshape(N * H * W, x_nhwc.shape[-1])   # 1x1 conv: free reshape
        Ho, Wo = H, W
    else:
        patches, (N, Ho, Wo) = _im2col(x_nhwc, k, s, k // 2)
    res2d = None if residual is None else residual.reshape(N * Ho * Wo, cp["c_out"])
    out = fused_gemm_bn_silu(patches, cp["w"], cp["b"], cp["c_out"], res2d)
    return out.reshape(N, Ho, Wo, cp["c_out"])


# ------------------------- IntermediateLevelP6 ------------------------------

class IntermediateLevelP6:
    """JAX/Pallas port of yolort IntermediateLevelP6 (version='r4.0', C3 block)."""

    def __init__(self, depth_multiple, in_channel, out_channel, key, version="r4.0"):
        assert version == "r4.0"  # TODO(synk): r3.1 / BottleneckCSP variant not implemented
        self.n = max(round(3 * depth_multiple), 1)
        self.c_ = out_channel // 2                               # C3 hidden channels (e=0.5)
        keys = jax.random.split(key, 4 + 2 * self.n)

        # Raw PyTorch-style params (kept only for the pure-JAX reference path).
        self._raw = dict(
            conv0=_init_conv_raw(keys[0], in_channel, out_channel, 3),     # k=3, s=2
            cv1=_init_conv_raw(keys[1], out_channel, self.c_, 1),
            cv2=_init_conv_raw(keys[2], out_channel, self.c_, 1),
            cv3=_init_conv_raw(keys[3], 2 * self.c_, out_channel, 1),
            bottlenecks=[(_init_conv_raw(keys[4 + 2 * i], self.c_, self.c_, 1),
                          _init_conv_raw(keys[5 + 2 * i], self.c_, self.c_, 3))
                         for i in range(self.n)],
        )

        # BN folded + transposed + lane-padded + bf16 -- done ONCE, not per forward.
        self.conv0 = _prep_conv(self._raw["conv0"])
        # cv1 and cv2 read the same input h -> fuse their weight columns into one GEMM.
        w1, b1 = _fold_bn(self._raw["cv1"])
        w2, b2 = _fold_bn(self._raw["cv2"])
        w12 = jnp.concatenate([w1[:, :, 0, 0].T, w2[:, :, 0, 0].T], axis=1)  # (C_in, 2*c_)
        b12 = jnp.concatenate([b1, b2])
        self.cv12 = _prep_w2d(w12, b12, k=1)
        self.cv3 = _prep_conv(self._raw["cv3"])
        self.bottlenecks = [(_prep_conv(pb1), _prep_conv(pb2))
                            for (pb1, pb2) in self._raw["bottlenecks"]]

    # ---- Pallas path ----
    def _p6(self, x_nchw):
        x = jnp.transpose(x_nchw, (0, 2, 3, 1))                  # NCHW -> NHWC
        h = conv_bn_silu(x, self.conv0, s=2)                     # Conv k=3 s=2
        ab = conv_bn_silu(h, self.cv12, s=1)                     # fused C3.cv1 + C3.cv2
        a, b = ab[..., :self.c_], ab[..., self.c_:]
        for (pb1, pb2) in self.bottlenecks:                      # Bottleneck(s)
            # TODO(synk): fuse the 1x1 -> 3x3(+residual) pair into one pallas_call
            # keeping the intermediate `t` in VMEM scratch (needs halo handling).
            t = conv_bn_silu(a, pb1, s=1)
            a = conv_bn_silu(t, pb2, s=1, residual=a)
        y = jnp.concatenate([a, b], axis=-1)                     # cat along channel
        out = conv_bn_silu(y, self.cv3, s=1)                     # C3.cv3
        return jnp.transpose(out, (0, 3, 1, 2))                  # NHWC -> NCHW

    def __call__(self, xs):
        xs = list(xs)
        xs.append(self._p6(xs[-1]))
        return xs

    # ---- pure-JAX reference (lax.conv, f32) for correctness check ----
    def _ref_conv(self, x_nhwc, p, s, residual=None):
        wf, bf = _fold_bn(p)
        k = p["k"]
        pad = k // 2
        y = lax.conv_general_dilated(
            x_nhwc, jnp.transpose(wf, (2, 3, 1, 0)), (s, s),
            [(pad, pad), (pad, pad)],
            dimension_numbers=("NHWC", "HWIO", "NHWC"),
            precision=lax.Precision.HIGHEST) + bf
        y = y * jax.nn.sigmoid(y)
        return y if residual is None else residual + y

    def _p6_ref(self, x_nchw):
        r = self._raw
        x = jnp.transpose(x_nchw, (0, 2, 3, 1))
        h = self._ref_conv(x, r["conv0"], 2)
        a = self._ref_conv(h, r["cv1"], 1)
        b = self._ref_conv(h, r["cv2"], 1)
        for (pb1, pb2) in r["bottlenecks"]:
            t = self._ref_conv(a, pb1, 1)
            a = self._ref_conv(t, pb2, 1, residual=a)
        out = self._ref_conv(jnp.concatenate([a, b], axis=-1), r["cv3"], 1)
        return jnp.transpose(out, (0, 3, 1, 2))


# --------------------------------- main -------------------------------------

if __name__ == "__main__":
    key = jax.random.PRNGKey(0)
    kp, k1, k2 = jax.random.split(key, 3)

    module = IntermediateLevelP6(depth_multiple=0.33, in_channel=4, out_channel=8, key=kp)

    # Input list of NCHW feature maps (only x[-1] is consumed by p6).
    x0 = jax.random.normal(k1, (2, 4, 32, 32), jnp.float32)
    x1 = jax.random.normal(k2, (2, 4, 16, 16), jnp.float32)
    xs = [x0, x1]

    outs = module(xs)
    outs = [jax.block_until_ready(o) for o in outs]

    assert len(outs) == 3
    assert outs[0].shape == (2, 4, 32, 32) and outs[1].shape == (2, 4, 16, 16)
    assert outs[2].shape == (2, 8, 8, 8)                     # P6: stride-2 -> 8x8, 8 channels

    ref = jax.block_until_ready(module._p6_ref(x1))
    err = float(jnp.max(jnp.abs(outs[2] - ref)))
    # bf16 MXU inputs vs f32-HIGHEST reference: allow a few-percent absolute slack.
    assert err < 5e-2, f"Pallas output mismatch vs reference (max abs err {err})"

    print("KERNEL_OK")
</pallas_src>

<mosaic_0001>
module attributes {stable_mosaic.version = 11 : i64} {
  func.func @_gemm_bn_silu_kernel(%arg0: i32, %arg1: i32, %arg2: i32, %arg3: memref<128x36xbf16, #tpu.memory_space<vmem>>, %arg4: memref<36x128xbf16, #tpu.memory_space<vmem>>, %arg5: memref<1x128xf32, #tpu.memory_space<vmem>>, %arg6: memref<128x128xf32, #tpu.memory_space<vmem>>, %arg7: memref<128x128xf32, #tpu.memory_space<vmem>>) attributes {dimension_semantics = [#tpu.dimension_semantics<parallel>, #tpu.dimension_semantics<parallel>, #tpu.dimension_semantics<arbitrary>], iteration_bounds = array<i64: 1, 1, 1>, scalar_prefetch = 0 : i64, scratch_operands = 1 : i64, tpu.core_type = #tpu.core_type<tc>, window_params = [{transform_indices = @transform_0, window_bounds = array<i64: 128, 36>}, {transform_indices = @transform_1, window_bounds = array<i64: 36, 128>}, {transform_indices = @transform_2, window_bounds = array<i64: 1, 128>}, {transform_indices = @transform_3, window_bounds = array<i64: 128, 128>}]} {
    %c0_i32 = arith.constant 0 : i32
    %0 = arith.cmpi eq, %arg2, %c0_i32 : i32
    %1 = arith.extui %0 : i1 to i32
    %c0_i32_0 = arith.constant 0 : i32
    %2 = arith.cmpi ne, %1, %c0_i32_0 : i32
    scf.if %2 {
      %cst_10 = arith.constant 0.000000e+00 : f32
      %12 = vector.broadcast %cst_10 : f32 to vector<128x128xf32>
      %c0_11 = arith.constant 0 : index
      %c0_12 = arith.constant 0 : index
      %13 = vector.load %arg7[%c0_11, %c0_12] : memref<128x128xf32, #tpu.memory_space<vmem>>, vector<128x128xf32>
      tpu.vector_store %arg7[%c0_11, %c0_12], %12 {strides = array<i32>} : memref<128x128xf32, #tpu.memory_space<vmem>>, vector<128x128xf32>,
    } else {
    }
    %c0 = arith.constant 0 : index
    %c0_1 = arith.constant 0 : index
    %3 = vector.load %arg7[%c0, %c0_1] : memref<128x128xf32, #tpu.memory_space<vmem>>, vector<128x128xf32>
    %c0_2 = arith.constant 0 : index
    %c0_3 = arith.constant 0 : index
    %4 = vector.load %arg3[%c0_2, %c0_3] : memref<128x36xbf16, #tpu.memory_space<vmem>>, vector<128x36xbf16>
    %c0_4 = arith.constant 0 : index
    %c0_5 = arith.constant 0 : index
    %5 = vector.load %arg4[%c0_4, %c0_5] : memref<36x128xbf16, #tpu.memory_space<vmem>>, vector<36x128xbf16>
    %cst = arith.constant dense<0.000000e+00> : vector<128x128xf32>
    %6 = tpu.matmul %4, %5, %cst {dimension_numbers = #tpu.dot_dimension_numbers<[1], [0], [0], [1], [0, 0, 1, 1], [], []>} : vector<128x36xbf16>, vector<36x128xbf16>, vector<128x128xf32> -> vector<128x128xf32>
    %7 = arith.addf %3, %6 : vector<128x128xf32>
    %c0_6 = arith.constant 0 : index
    %c0_7 = arith.constant 0 : index
    %8 = vector.load %arg7[%c0_6, %c0_7] : memref<128x128xf32, #tpu.memory_space<vmem>>, vector<128x128xf32>
    tpu.vector_store %arg7[%c0_6, %c0_7], %7 {strides = array<i32>} : memref<128x128xf32, #tpu.memory_space<vmem>>, vector<128x128xf32>,
    %c0_i32_8 = arith.constant 0 : i32
    %9 = arith.cmpi eq, %arg2, %c0_i32_8 : i32
    %10 = arith.extui %9 : i1 to i32
    %c0_i32_9 = arith.constant 0 : i32
    %11 = arith.cmpi ne, %10, %c0_i32_9 : i32
    scf.if %11 {
      %c0_10 = arith.constant 0 : index
      %c0_11 = arith.constant 0 : index
      %12 = vector.load %arg7[%c0_10, %c0_11] : memref<128x128xf32, #tpu.memory_space<vmem>>, vector<128x128xf32>
      %c0_12 = arith.constant 0 : index
      %c0_13 = arith.constant 0 : index
      %13 = vector.load %arg5[%c0_12, %c0_13] : memref<1x128xf32, #tpu.memory_space<vmem>>, vector<1x128xf32>
      %14 = vector.broadcast %13 : vector<1x128xf32> to vector<128x128xf32>
      %15 = arith.addf %12, %14 : vector<128x128xf32>
      %16 = arith.negf %15 : vector<128x128xf32>
      %17 = math.exp %16 : vector<128x128xf32>
      %cst_14 = arith.constant 1.000000e+00 : f32
      %18 = vector.broadcast %cst_14 : f32 to vector<128x128xf32>
      %19 = arith.addf %18, %17 : vector<128x128xf32>
      %20 = arith.divf %18, %19 : vector<128x128xf32>
      %21 = arith.mulf %15, %20 : vector<128x128xf32>
      %c0_15 = arith.constant 0 : index
      %c0_16 = arith.constant 0 : index
      %22 = vector.load %arg6[%c0_15, %c0_16] : memref<128x128xf32, #tpu.memory_space<vmem>>, vector<128x128xf32>
      tpu.vector_store %arg6[%c0_15, %c0_16], %21 {strides = array<i32>} : memref<128x128xf32, #tpu.memory_space<vmem>>, vector<128x128xf32>,
    } else {
    }
    return
  }
  func.func @transform_0(%arg0: i32, %arg1: i32, %arg2: i32) -> (i32, i32) {
    %c0_i32 = arith.constant 0 : i32
    return %arg0, %arg2 : i32, i32
  }
  func.func @transform_1(%arg0: i32, %arg1: i32, %arg2: i32) -> (i32, i32) {
    %c0_i32 = arith.constant 0 : i32
    return %arg2, %arg1 : i32, i32
  }
  func.func @transform_2(%arg0: i32, %arg1: i32, %arg2: i32) -> (i32, i32) {
    %c0_i32 = arith.constant 0 : i32
    %c0_i32_0 = arith.constant 0 : i32
    return %c0_i32, %arg1 : i32, i32
  }
  func.func @transform_3(%arg0: i32, %arg1: i32, %arg2: i32) -> (i32, i32) {
    %c0_i32 = arith.constant 0 : i32
    return %arg0, %arg1 : i32, i32
  }
}

</mosaic_0001>

<bundles_post_ra>
// kernel: tpu_custom_call.1
= control target key start
LH: loop header
LB: loop body
LE: loop exit
PB: predicated region body
PF: predicated region fallthrough
CT: control target
= control target key end

     0   :  { %vm153_vm0 = vcmask 1041408   ;;  %s1151_s0 = inlined_call_operand.vmem [shape: bf16[128,36], index: 0, kind: input, shape index: {}]   ;;  %s1152_s1 = inlined_call_operand.vmem [shape: bf16[36,128], index: 1, kind: input, shape index: {}]   ;;  %s1153_s2 = inlined_call_operand.vmem [shape: f32[1,128], index: 2, kind: input, shape index: {}]   ;;  %s1154_s3 = inlined_call_operand.hbm [shape: f32[128,128], index: 3, kind: output, shape index: {}]  }
   0x1   :  { %v72_v0 = vld [vmem:[%s1152_s1 + $0x10] sm:$0x3] }
   0x2   :  { %v122_v1 = vunpack.c.l.b16 %v72_v0 }
   0x4   :  { %v125_v2 = vpack.c.b16 %v122_v1, %v122_v1 }
   0x5   :  { %8 = vsyncpa [#allocation4], 0  ;;  %v704_v4 = vld [vmem:[%s1152_s1 + $0x8] sm:$0xff]  ;;  %v703_v5 = vld [vmem:[%s1152_s1] sm:$0xff]  ;;  %vm128_vm1 = vcmask 293888   ;;  %s619_s10 = sshll.u32 %s1154_s3, 4  ;;  %s620_s10 = int_to_ptr.hbm [resolvable:$true] %s619_s10 }
   0x6   :  { %v155_v3 = vsel %vm153_vm0, %v125_v2, 0  ;;  %v695_v6 = vld [vmem:[%s1151_s0] sm:$0xff]  ;;  %v697_v7 = vld [vmem:[%s1151_s0 + $0x10] sm:$0xff]  ;;  %v696_v10 = vld [vmem:[%s1151_s0 + $0x8] sm:$0xff]  ;;  %s809_s11 = smov 128   ;;  %s810_s12 = smov 8  }
   0x7   :  { %162 = vmatpush.bf16.msra.mxu0 %v155_v3  ;;  %705 = vmatpush.bf16.msra.mxu1 %v155_v3  ;;  %v699_v8 = vld [vmem:[%s1151_s0 + $0x20] sm:$0xff]  ;;  %v701_v9 = vld [vmem:[%s1151_s0 + $0x30] sm:$0xff]  ;;  %v698_v11 = vld [vmem:[%s1151_s0 + $0x18] sm:$0xff] }
   0x8   :  { %706 = vmatpush.bf16.msra.mxu2 %v155_v3  ;;  %707 = vmatpush.bf16.msra.mxu3 %v155_v3  ;;  %v700_v12 = vld [vmem:[%s1151_s0 + $0x28] sm:$0xff]  ;;  %v702_v13 = vld [vmem:[%s1151_s0 + $0x38] sm:$0xff]  ;;  %v875_v14 = vld [vmem:[%s1153_s2] ss:$0 sm:$0xff]  ;;  %s808_s0 = smov [#allocation3]  }
   0x9   :  { %s617_s2 = sshll.u32 %s808_s0, 4  ;;  %s618_s2 = int_to_ptr.vmem [resolvable:$true] %s617_s2 }
   0xb   :  { %163 = vmatpush.bf16.msra.mxu0 %v704_v4  ;;  %708 = vmatpush.bf16.msra.mxu1 %v704_v4 }
   0xc   :  { %709 = vmatpush.bf16.msra.mxu2 %v704_v4  ;;  %710 = vmatpush.bf16.msra.mxu3 %v704_v4 }
   0xf   :  { %164 = vmatpush.bf16.msra.mxu0 %v703_v5  ;;  %711 = vmatpush.bf16.msra.mxu1 %v703_v5 }
  0x10   :  { %712 = vmatpush.bf16.msra.mxu2 %v703_v5  ;;  %713 = vmatpush.bf16.msra.mxu3 %v703_v5 }
  0x12   :  { %671 = vmatmul.msk.bf16.vlgmr.msra.gmra.mxu0 %vm128_vm1, %v695_v6  ;;  %673 = vmatmul.msk.bf16.vlgmr.msra.gmra.mxu1 %vm128_vm1, %v697_v7 }
  0x13   :  { %675 = vmatmul.msk.bf16.vlgmr.msra.gmra.mxu2 %vm128_vm1, %v699_v8  ;;  %677 = vmatmul.msk.bf16.vlgmr.msra.gmra.mxu3 %vm128_vm1, %v701_v9 }
  0x22   :  { %672 = vmatmul.msk.bf16.gmra.mxu0 %vm128_vm1, %v696_v10  ;;  %674 = vmatmul.msk.bf16.gmra.mxu1 %vm128_vm1, %v698_v11 }
  0x23   :  { %676 = vmatmul.msk.bf16.gmra.mxu2 %vm128_vm1, %v700_v12  ;;  %678 = vmatmul.msk.bf16.gmra.mxu3 %vm128_vm1, %v702_v13 }
  0x8f   :  { %v166_v15 = vpop.f32.mrf.mxu0  ;;  %v176_v16 = vpop.f32.mrf.mxu1 }
  0x90   :  { %v878_v17 = vadd.f32 %v875_v14, %v166_v15  ;;  %v881_v18 = vadd.f32 %v875_v14, %v176_v16 }
  0x92   :  { %v679_v19 = vmul.f32 -1.442695, %v878_v17  ;;  %v683_v20 = vmul.f32 -1.442695, %v881_v18 }
  0x94   :  { %718 = vpow2.f32 %v679_v19 }
  0x95   :  { %720 = vpow2.f32 %v683_v20 }
  0x96   :  { %v186_v21 = vpop.f32.mrf.mxu2  ;;  %v196_v22 = vpop.f32.mrf.mxu3 }
  0x97   :  { %v886_v23 = vadd.f32 %v875_v14, %v186_v21  ;;  %v889_v24 = vadd.f32 %v875_v14, %v196_v22  ;;  %v168_v25 = vpop.f32.mrf.mxu0  ;;  %v178_v26 = vpop.f32.mrf.mxu1 }
  0x98   :  { %v892_v27 = vadd.f32 %v875_v14, %v168_v25  ;;  %v895_v28 = vadd.f32 %v875_v14, %v178_v26 }
  0x99   :  { %v687_v29 = vmul.f32 -1.442695, %v886_v23  ;;  %v691_v30 = vmul.f32 -1.442695, %v889_v24 }
  0x9a   :  { %v719_v31 = vpop.eup %718  ;;  %v680_v34 = vmul.f32 -1.442695, %v892_v27  ;;  %v684_v36 = vmul.f32 -1.442695, %v895_v28 }
  0x9b   :  { %v721_v32 = vpop.eup %720  ;;  %v899_v33 = vadd.f32 1.0, %v719_v31  ;;  %722 = vpow2.f32 %v687_v29 }
  0x9c   :  { %v902_v35 = vadd.f32 1.0, %v721_v32  ;;  %724 = vpow2.f32 %v691_v30 }
  0x9d   :  { %726 = vrcp.f32 %v899_v33  ;;  %v350_v41 = vand.u32 2147483647, %v899_v33  ;;  %v352_v42 = vand.u32 2147483648, %v899_v33  ;;  %vm346_vm2 = vweird.f32 %v899_v33 }
  0x9e   :  { %728 = vrcp.f32 %v902_v35  ;;  %v188_v37 = vpop.f32.mrf.mxu2  ;;  %v198_v38 = vpop.f32.mrf.mxu3  ;;  %v410_v44 = vand.u32 2147483647, %v902_v35  ;;  %v412_v45 = vand.u32 2147483648, %v902_v35  ;;  %vm406_vm3 = vweird.f32 %v902_v35 }
  0x9f   :  { %730 = vpow2.f32 %v680_v34  ;;  %v908_v39 = vadd.f32 %v875_v14, %v188_v37  ;;  %v171_v40 = vpop.f32.mrf.mxu0  ;;  %v916_v47 = vadd.f32 %v875_v14, %v198_v38  ;;  %v181_v53 = vpop.f32.mrf.mxu1  ;;  %vm928_vm4 = vcmp.eq.f32.partialorder %v350_v41, 8.507059e+37 }
  0xa0   :  { %732 = vpow2.f32 %v684_v36  ;;  %v921_v50 = vadd.f32 %v875_v14, %v171_v40  ;;  %v353_v57 = vor.u32 1.1754944e-38, %v352_v42  ;;  %vm934_vm5 = vcmp.eq.f32.partialorder %v410_v44, 8.507059e+37 }
  0xa1   :  { %v723_v43 = vpop.eup %722  ;;  %v688_v46 = vmul.f32 -1.442695, %v908_v39  ;;  %v413_v61 = vor.u32 1.1754944e-38, %v412_v45  ;;  %v692_v62 = vmul.f32 -1.442695, %v916_v47  ;;  %v942_v2 = vadd.f32 %v875_v14, %v181_v53 }
  0xa2   :  { %v725_v48 = vpop.eup %724  ;;  %v918_v49 = vadd.f32 1.0, %v723_v43  ;;  %v681_v1 = vmul.f32 -1.442695, %v921_v50 }
  0xa3   :  { %v727_v51 = vpop.eup %726  ;;  %v925_v52 = vadd.f32 1.0, %v725_v48  ;;  %v955_v15 = vmul.f32 -1.442695, %v942_v2 }
  0xa4   :  { %v729_v54 = vpop.eup %728  ;;  %v342_v55 = vmul.f32 %v727_v51, %v899_v33  ;;  %734 = vrcp.f32 %v918_v49  ;;  %vm347_vm6 = vweird.f32 %v727_v51  ;;  %v470_v4 = vand.u32 2147483647, %v918_v49 }
  0xa5   :  { %v731_v58 = vpop.eup %730  ;;  %v402_v59 = vmul.f32 %v729_v54, %v902_v35  ;;  %736 = vpow2.f32 %v688_v46  ;;  %v472_v5 = vand.u32 2147483648, %v918_v49  ;;  %v532_v7 = vand.u32 2147483648, %v925_v52  ;;  %vm348_vm9 = vmor %vm346_vm2, %vm347_vm6 }
  0xa6   :  { %v733_v63 = vpop.eup %732  ;;  %v343_v0 = vsub.f32 1.0, %v342_v55  ;;  %738 = vrcp.f32 %v925_v52  ;;  %v947_v8 = vadd.f32 1.0, %v731_v58  ;;  %vm407_vm7 = vweird.f32 %v729_v54  ;;  %v191_v22 = vpop.f32.mrf.mxu2 }
  0xa7   :  { %v403_v3 = vsub.f32 1.0, %v402_v59  ;;  %v949_v9 = vadd.f32 1.0, %v733_v63  ;;  %v530_v11 = vand.u32 2147483647, %v925_v52  ;;  %740 = vpow2.f32 %v692_v62  ;;  %vm408_vm12 = vmor %vm406_vm3, %vm407_vm7 }
  0xa8   :  { %v344_v6 = vmul.f32 %v727_v51, %v343_v0  ;;  %vm466_vm8 = vweird.f32 %v918_v49  ;;  %742 = vrcp.f32 %v947_v8  ;;  %vm961_vm10 = vcmp.eq.f32.partialorder %v470_v4, 8.507059e+37 }
  0xa9   :  { %v404_v10 = vmul.f32 %v729_v54, %v403_v3  ;;  %vm526_vm11 = vweird.f32 %v925_v52  ;;  %v473_v29 = vor.u32 1.1754944e-38, %v472_v5  ;;  %v533_v30 = vor.u32 1.1754944e-38, %v532_v7 }
  0xaa   :  { %v735_v12 = vpop.eup %734  ;;  %v345_v13 = vadd.f32 %v727_v51, %v344_v6  ;;  %744 = vrcp.f32 %v949_v9  ;;  %vm973_vm13 = vcmp.eq.f32.partialorder %v530_v11, 8.507059e+37  ;;  %v365_v38 = vand.u32 2147483647, %v947_v8 }
  0xab   :  { %v737_v16 = vpop.eup %736  ;;  %v405_v19 = vadd.f32 %v729_v54, %v404_v10  ;;  %v462_v20 = vmul.f32 %v735_v12, %v918_v49  ;;  %v982_v40 = vadd.f32 %v875_v14, %v191_v22  ;;  %vm467_vm14 = vweird.f32 %v735_v12 }
  0xac   :  { %v739_v25 = vpop.eup %738  ;;  %v349_v26 = vsel %vm348_vm9, %v727_v51, %v345_v13  ;;  %vm361_vm15 = vweird.f32 %v947_v8  ;;  %v987_v46 = vadd.f32 1.0, %v737_v16  ;;  %746 = vpow2.f32 %v681_v1  ;;  %vm468_vm1 = vmor %vm466_vm8, %vm467_vm14 }
  0xad   :  { %v354_v31 = vsel %vm928_vm4, %v353_v57, %v349_v26  ;;  %v409_v32 = vsel %vm408_vm12, %v729_v54, %v405_v19  ;;  %v463_v33 = vsub.f32 1.0, %v462_v20  ;;  %v522_v34 = vmul.f32 %v739_v25, %v925_v52  ;;  %v741_v41 = vpop.eup %740 }
  0xae   :  { %v581_v37 = vmul.f32 %v354_v31, %v878_v17  ;;  %v414_v35 = vsel %vm934_vm5, %v413_v61, %v409_v32  ;;  %v743_v45 = vpop.eup %742  ;;  %v367_v17 = vand.u32 2147483648, %v947_v8  ;;  %vm527_vm0 = vweird.f32 %v739_v25 }
  0xaf   :  { %v585_v42 = vmul.f32 %v414_v35, %v881_v18  ;;  %v464_v43 = vmul.f32 %v735_v12, %v463_v33  ;;  %v523_v44 = vsub.f32 1.0, %v522_v34  ;;  %v357_v53 = vmul.f32 %v743_v45, %v947_v8  ;;  %vm528_vm3 = vmor %vm526_vm11, %vm527_vm0  ;;  %v183_v35 = vpop.f32.mrf.mxu1 }
  0xb0   :  { %597 = vst [vmem:[#allocation3] sm:$0xff] %v581_v37  ;;  %v745_v54 = vpop.eup %744  ;;  %vm992_vm2 = vcmp.eq.f32.partialorder %v365_v38, 8.507059e+37  ;;  %v425_v55 = vand.u32 2147483647, %v949_v9  ;;  %748 = vrcp.f32 %v987_v46  ;;  %v998_v56 = vadd.f32 1.0, %v741_v41  ;;  %v173_v37 = vpop.f32.mrf.mxu0 }
  0xb1   :  { %601 = vst [vmem:[#allocation3 + $0x20] sm:$0xff] %v585_v42  ;;  %v465_v48 = vadd.f32 %v735_v12, %v464_v43  ;;  %v524_v51 = vmul.f32 %v739_v25, %v523_v44  ;;  %v358_v59 = vsub.f32 1.0, %v357_v53  ;;  %v417_v60 = vmul.f32 %v745_v54, %v949_v9 }
  0xb2   :  { %vm362_vm4 = vweird.f32 %v743_v45  ;;  %vm421_vm5 = vweird.f32 %v949_v9  ;;  %v427_v49 = vand.u32 2147483648, %v949_v9  ;;  %v747_v3 = vpop.eup %746  ;;  %v368_v5 = vor.u32 1.1754944e-38, %v367_v17 }
  0xb3   :  { %v469_v57 = vsel %vm468_vm1, %v735_v12, %v465_v48  ;;  %v525_v58 = vadd.f32 %v739_v25, %v524_v51  ;;  %v359_v0 = vmul.f32 %v743_v45, %v358_v59  ;;  %v418_v1 = vsub.f32 1.0, %v417_v60  ;;  %vm363_vm8 = vmor %vm361_vm15, %vm362_vm4 }
  0xb4   :  { %v474_v61 = vsel %vm961_vm10, %v473_v29, %v469_v57  ;;  %vm1010_vm6 = vcmp.eq.f32.partialorder %v425_v55, 8.507059e+37  ;;  %750 = vrcp.f32 %v998_v56  ;;  %vm422_vm7 = vweird.f32 %v745_v54 }
  0xb5   :  { %v589_v62 = vmul.f32 %v474_v61, %v886_v23  ;;  %v529_v63 = vsel %vm528_vm3, %v739_v25, %v525_v58  ;;  %v360_v7 = vadd.f32 %v743_v45, %v359_v0  ;;  %v419_v10 = vmul.f32 %v745_v54, %v418_v1  ;;  %v201_v23 = vpop.f32.mrf.mxu3  ;;  %vm423_vm9 = vmor %vm421_vm5, %vm422_vm7 }
  0xb6   :  { %v534_v4 = vsel %vm973_vm13, %v533_v30, %v529_v63  ;;  %v749_v11 = vpop.eup %748  ;;  %v485_v12 = vand.u32 2147483647, %v987_v46  ;;  %v487_v13 = vand.u32 2147483648, %v987_v46  ;;  %v1021_v16 = vadd.f32 1.0, %v747_v3 }
  0xb7   :  { %605 = vst [vmem:[#allocation3 + $0x40] sm:$0xff] %v589_v62  ;;  %v593_v52 = vmul.f32 %v534_v4, %v889_v24  ;;  %752 = vpow2.f32 %v955_v15  ;;  %v364_v19 = vsel %vm363_vm8, %v743_v45, %v360_v7  ;;  %v420_v24 = vadd.f32 %v745_v54, %v419_v10 }
  0xb8   :  { %v428_v20 = vor.u32 1.1754944e-38, %v427_v49  ;;  %v477_v21 = vmul.f32 %v749_v11, %v987_v46  ;;  %v369_v22 = vsel %vm992_vm2, %v368_v5, %v364_v19  ;;  %vm481_vm10 = vweird.f32 %v987_v46 }
  0xb9   :  { %609 = vst [vmem:[#allocation3 + $0x60] sm:$0xff] %v593_v52  ;;  %v545_v8 = vand.u32 2147483647, %v998_v56  ;;  %754 = vrcp.f32 %v1021_v16  ;;  %v582_v15 = vmul.f32 %v369_v22, %v892_v27  ;;  %v424_v25 = vsel %vm423_vm9, %v745_v54, %v420_v24  ;;  %v193_v54 = vpop.f32.mrf.mxu2 }
  0xba   :  { %v478_v26 = vsub.f32 1.0, %v477_v21  ;;  %v547_v29 = vand.u32 2147483648, %v998_v56  ;;  %v751_v30 = vpop.eup %750  ;;  %v429_v31 = vsel %vm1010_vm6, %v428_v20, %v424_v25  ;;  %vm1036_vm11 = vcmp.eq.f32.partialorder %v485_v12, 8.507059e+37 }
  0xbb   :  { %v488_v9 = vor.u32 1.1754944e-38, %v487_v13  ;;  %v689_v33 = vmul.f32 -1.442695, %v982_v40  ;;  %598 = vst [vmem:[#allocation3 + $0x8] sm:$0xff] %v582_v15  ;;  %v586_v34 = vmul.f32 %v429_v31, %v895_v28  ;;  %vm482_vm12 = vweird.f32 %v749_v11 }
  0xbc   :  { %v479_v36 = vmul.f32 %v749_v11, %v478_v26  ;;  %v537_v27 = vmul.f32 %v751_v30, %v998_v56  ;;  %vm541_vm13 = vweird.f32 %v998_v56  ;;  %vm1044_vm14 = vcmp.eq.f32.partialorder %v545_v8, 8.507059e+37  ;;  %vm483_vm15 = vmor %vm481_vm10, %vm482_vm12 }
  0xbd   :  { %v753_v38 = vpop.eup %752  ;;  %756 = vpow2.f32 %v689_v33  ;;  %v1049_v42 = vadd.f32 %v875_v14, %v201_v23  ;;  %602 = vst [vmem:[#allocation3 + $0x28] sm:$0xff] %v586_v34  ;;  %v548_v44 = vor.u32 1.1754944e-38, %v547_v29  ;;  %vm376_vm0 = vweird.f32 %v1021_v16  ;;  %v203_v58 = vpop.f32.mrf.mxu3 }
  0xbe   :  { %v480_v43 = vadd.f32 %v749_v11, %v479_v36  ;;  %v538_v28 = vsub.f32 1.0, %v537_v27  ;;  %v1051_v45 = vadd.f32 1.0, %v753_v38  ;;  %v1059_v51 = vadd.f32 %v875_v14, %v173_v37 }
  0xbf   :  { %v755_v17 = vpop.eup %754  ;;  %v693_v48 = vmul.f32 -1.442695, %v1049_v42  ;;  %v1062_v53 = vadd.f32 %v875_v14, %v183_v35  ;;  %vm542_vm1 = vweird.f32 %v751_v30  ;;  %v380_v59 = vand.u32 2147483647, %v1021_v16 }
  0xc0   :  { %v484_v18 = vsel %vm483_vm15, %v749_v11, %v480_v43  ;;  %v539_v55 = vmul.f32 %v751_v30, %v538_v28  ;;  %v372_v57 = vmul.f32 %v755_v17, %v1021_v16  ;;  %v382_v60 = vand.u32 2147483648, %v1021_v16  ;;  %vm543_vm2 = vmor %vm541_vm13, %vm542_vm1 }
  0xc1   :  { %v489_v46 = vsel %vm1036_vm11, %v488_v9, %v484_v18  ;;  %758 = vrcp.f32 %v1051_v45  ;;  %v1072_v63 = vadd.f32 %v875_v14, %v193_v54  ;;  %v682_v1 = vmul.f32 -1.442695, %v1059_v51 }
  0xc2   :  { %v590_v61 = vmul.f32 %v489_v46, %v908_v39  ;;  %v540_v49 = vadd.f32 %v751_v30, %v539_v55  ;;  %v373_v62 = vsub.f32 1.0, %v372_v57  ;;  %760 = vpow2.f32 %v693_v48 }
  0xc3   :  { %v757_v0 = vpop.eup %756  ;;  %v686_v3 = vmul.f32 -1.442695, %v1062_v53  ;;  %v1079_v4 = vadd.f32 %v875_v14, %v203_v58  ;;  %vm377_vm3 = vweird.f32 %v755_v17  ;;  %762 = vpow2.f32 %v682_v1 }
  0xc4   :  { %606 = vst [vmem:[#allocation3 + $0x48] sm:$0xff] %v590_v61  ;;  %v544_v5 = vsel %vm543_vm2, %v751_v30, %v540_v49  ;;  %v374_v39 = vmul.f32 %v755_v17, %v373_v62  ;;  %v1081_v6 = vadd.f32 1.0, %v757_v0  ;;  %v690_v10 = vmul.f32 -1.442695, %v1072_v63  ;;  %vm378_vm4 = vmor %vm376_vm0, %vm377_vm3 }
  0xc5   :  { %v549_v52 = vsel %vm1044_vm14, %v548_v44, %v544_v5  ;;  %v383_v14 = vor.u32 1.1754944e-38, %v382_v60  ;;  %v694_v11 = vmul.f32 -1.442695, %v1079_v4  ;;  %vm381_vm5 = vcmp.eq.f32.partialorder %v380_v59, 8.507059e+37 }
  0xc6   :  { %v594_v56 = vmul.f32 %v549_v52, %v916_v47  ;;  %v375_v7 = vadd.f32 %v755_v17, %v374_v39  ;;  %764 = vrcp.f32 %v1081_v6  ;;  %vm436_vm6 = vweird.f32 %v1051_v45 }
  0xc7   :  { %v759_v23 = vpop.eup %758  ;;  %766 = vpow2.f32 %v686_v3  ;;  %v442_v16 = vand.u32 2147483648, %v1051_v45  ;;  %v440_v25 = vand.u32 2147483647, %v1051_v45  ;;  %v502_v36 = vand.u32 2147483648, %v1081_v6 }
  0xc8   :  { %610 = vst [vmem:[#allocation3 + $0x68] sm:$0xff] %v594_v56  ;;  %v379_v12 = vsel %vm378_vm4, %v755_v17, %v375_v7  ;;  %v432_v13 = vmul.f32 %v759_v23, %v1051_v45  ;;  %v761_v19 = vpop.eup %760  ;;  %768 = vpow2.f32 %v690_v10  ;;  %vm437_vm7 = vweird.f32 %v759_v23 }
  0xc9   :  { %v384_v47 = vsel %vm381_vm5, %v383_v14, %v379_v12  ;;  %v1093_v21 = vadd.f32 1.0, %v761_v19  ;;  %v763_v22 = vpop.eup %762  ;;  %770 = vpow2.f32 %v694_v11  ;;  %vm438_vm8 = vmor %vm436_vm6, %vm437_vm7  ;;  %v443_v32 = vor.u32 1.1754944e-38, %v442_v16 }
  0xca   :  { %v583_v24 = vmul.f32 %v384_v47, %v921_v50  ;;  %v433_v20 = vsub.f32 1.0, %v432_v13  ;;  %v1100_v29 = vadd.f32 1.0, %v763_v22  ;;  %vm441_vm9 = vcmp.eq.f32.partialorder %v440_v25, 8.507059e+37 }
  0xcb   :  { %772 = vrcp.f32 %v1093_v21  ;;  %v500_v38 = vand.u32 2147483647, %v1081_v6  ;;  %vm496_vm11 = vweird.f32 %v1081_v6  ;;  %v503_v45 = vor.u32 1.1754944e-38, %v502_v36 }
  0xcc   :  { %v765_v8 = vpop.eup %764  ;;  %599 = vst [vmem:[#allocation3 + $0x10] sm:$0xff] %v583_v24  ;;  %v434_v15 = vmul.f32 %v759_v23, %v433_v20  ;;  %774 = vrcp.f32 %v1100_v29  ;;  %v560_v17 = vand.u32 2147483647, %v1093_v21  ;;  %v562_v48 = vand.u32 2147483648, %v1093_v21 }
  0xcd   :  { %v767_v26 = vpop.eup %766  ;;  %v492_v50 = vmul.f32 %v765_v8, %v1081_v6  ;;  %vm497_vm10 = vweird.f32 %v765_v8  ;;  %vm501_vm13 = vcmp.eq.f32.partialorder %v500_v38, 8.507059e+37  ;;  %vm556_vm15 = vweird.f32 %v1093_v21 }
  0xce   :  { %v435_v30 = vadd.f32 %v759_v23, %v434_v15  ;;  %v1102_v31 = vadd.f32 1.0, %v767_v26  ;;  %v769_v33 = vpop.eup %768  ;;  %vm498_vm12 = vmor %vm496_vm11, %vm497_vm10  ;;  %vm1122_vm0 = vcmp.eq.f32.partialorder %v560_v17, 8.507059e+37  ;;  %v563_v0 = vor.u32 1.1754944e-38, %v562_v48 }
  0xcf   :  { %v493_v9 = vsub.f32 1.0, %v492_v50  ;;  %v771_v27 = vpop.eup %770  ;;  %v1113_v54 = vadd.f32 1.0, %v769_v33  ;;  %v397_v5 = vand.u32 2147483648, %v1100_v29  ;;  %v395_v6 = vand.u32 2147483647, %v1100_v29 }
  0xd0   :  { %v439_v34 = vsel %vm438_vm8, %v759_v23, %v435_v30  ;;  %776 = vrcp.f32 %v1102_v31  ;;  %v1115_v58 = vadd.f32 1.0, %v771_v27  ;;  %v457_v52 = vand.u32 2147483648, %v1102_v31 }
  0xd1   :  { %v444_v37 = vsel %vm441_vm9, %v443_v32, %v439_v34  ;;  %v494_v35 = vmul.f32 %v765_v8, %v493_v9  ;;  %v773_v41 = vpop.eup %772  ;;  %778 = vrcp.f32 %v1113_v54  ;;  %v455_v10 = vand.u32 2147483647, %v1102_v31 }
  0xd2   :  { %v587_v43 = vmul.f32 %v444_v37, %v942_v2  ;;  %v552_v44 = vmul.f32 %v773_v41, %v1093_v21  ;;  %v775_v18 = vpop.eup %774  ;;  %vm557_vm14 = vweird.f32 %v773_v41  ;;  %780 = vrcp.f32 %v1115_v58 }
  0xd3   :  { %v495_v28 = vadd.f32 %v765_v8, %v494_v35  ;;  %v387_v59 = vmul.f32 %v775_v18, %v1100_v29  ;;  %vm558_vm1 = vmor %vm556_vm15, %vm557_vm14  ;;  %vm392_vm2 = vweird.f32 %v775_v18  ;;  %vm391_vm4 = vweird.f32 %v1100_v29 }
  0xd4   :  { %603 = vst [vmem:[#allocation3 + $0x30] sm:$0xff] %v587_v43  ;;  %v553_v57 = vsub.f32 1.0, %v552_v44  ;;  %vm451_vm5 = vweird.f32 %v1102_v31  ;;  %vm393_vm6 = vmor %vm391_vm4, %vm392_vm2  ;;  %v398_v13 = vor.u32 1.1754944e-38, %v397_v5  ;;  %vm396_vm7 = vcmp.eq.f32.partialorder %v395_v6, 8.507059e+37 }
  0xd5   :  { %v499_v55 = vsel %vm498_vm12, %v765_v8, %v495_v28  ;;  %v388_v1 = vsub.f32 1.0, %v387_v59  ;;  %v458_v20 = vor.u32 1.1754944e-38, %v457_v52  ;;  %vm456_vm9 = vcmp.eq.f32.partialorder %v455_v10, 8.507059e+37 }
  0xd6   :  { %v777_v2 = vpop.eup %776  ;;  %v504_v46 = vsel %vm501_vm13, %v503_v45, %v499_v55  ;;  %v554_v61 = vmul.f32 %v773_v41, %v553_v57  ;;  %v515_v30 = vand.u32 2147483647, %v1113_v54  ;;  %vm511_vm11 = vweird.f32 %v1113_v54 }
  0xd7   :  { %v591_v60 = vmul.f32 %v504_v46, %v982_v40  ;;  %v447_v49 = vmul.f32 %v777_v2, %v1102_v31  ;;  %v389_v40 = vmul.f32 %v775_v18, %v388_v1  ;;  %vm452_vm3 = vweird.f32 %v777_v2  ;;  %v779_v23 = vpop.eup %778 }
  0xd8   :  { %v555_v3 = vadd.f32 %v773_v41, %v554_v61  ;;  %v507_v47 = vmul.f32 %v779_v23, %v1113_v54  ;;  %vm453_vm8 = vmor %vm451_vm5, %vm452_vm3  ;;  %v781_v21 = vpop.eup %780  ;;  %vm512_vm10 = vweird.f32 %v779_v23  ;;  %v577_v9 = vand.u32 2147483648, %v1115_v58 }
  0xd9   :  { %607 = vst [vmem:[#allocation3 + $0x50] sm:$0xff] %v591_v60  ;;  %v448_v39 = vsub.f32 1.0, %v447_v49  ;;  %v390_v11 = vadd.f32 %v775_v18, %v389_v40  ;;  %v567_v26 = vmul.f32 %v781_v21, %v1115_v58  ;;  %vm513_vm12 = vmor %vm511_vm11, %vm512_vm10  ;;  %vm572_vm13 = vweird.f32 %v781_v21 }
  0xda   :  { %v559_v56 = vsel %vm558_vm1, %v773_v41, %v555_v3  ;;  %v508_v8 = vsub.f32 1.0, %v507_v47  ;;  %v575_v34 = vand.u32 2147483647, %v1115_v58  ;;  %vm516_vm14 = vcmp.eq.f32.partialorder %v515_v30, 8.507059e+37 }
  0xdb   :  { %v449_v7 = vmul.f32 %v777_v2, %v448_v39  ;;  %v564_v14 = vsel %vm1122_vm0, %v563_v0, %v559_v56  ;;  %v394_v24 = vsel %vm393_vm6, %v775_v18, %v390_v11  ;;  %v568_v31 = vsub.f32 1.0, %v567_v26 }
  0xdc   :  { %v595_v12 = vmul.f32 %v564_v14, %v1049_v42  ;;  %v399_v22 = vsel %vm396_vm7, %v398_v13, %v394_v24  ;;  %v517_v42 = vand.u32 2147483648, %v1113_v54  ;;  %v509_v29 = vmul.f32 %v779_v23, %v508_v8 }
  0xdd   :  { %v450_v19 = vadd.f32 %v777_v2, %v449_v7  ;;  %v584_v15 = vmul.f32 %v399_v22, %v1059_v51  ;;  %v569_v33 = vmul.f32 %v781_v21, %v568_v31  ;;  %vm571_vm15 = vweird.f32 %v1115_v58 }
  0xde   :  { %611 = vst [vmem:[#allocation3 + $0x70] sm:$0xff] %v595_v12  ;;  %v510_v32 = vadd.f32 %v779_v23, %v509_v29  ;;  %v518_v51 = vor.u32 1.1754944e-38, %v517_v42  ;;  %vm573_vm0 = vmor %vm571_vm15, %vm572_vm13  ;;  %v578_v35 = vor.u32 1.1754944e-38, %v577_v9  ;;  %vm576_vm1 = vcmp.eq.f32.partialorder %v575_v34, 8.507059e+37 }
  0xdf   :  { %v454_v16 = vsel %vm453_vm8, %v777_v2, %v450_v19  ;;  %600 = vst [vmem:[#allocation3 + $0x18] sm:$0xff] %v584_v15  ;;  %v570_v27 = vadd.f32 %v781_v21, %v569_v33 }
  0xe0   :  { %v459_v25 = vsel %vm456_vm9, %v458_v20, %v454_v16  ;;  %v514_v36 = vsel %vm513_vm12, %v779_v23, %v510_v32 }
  0xe1   :  { %v588_v50 = vmul.f32 %v459_v25, %v1062_v53  ;;  %v519_v53 = vsel %vm516_vm14, %v518_v51, %v514_v36  ;;  %v574_v38 = vsel %vm573_vm0, %v781_v21, %v570_v27 }
  0xe2   :  { %v592_v37 = vmul.f32 %v519_v53, %v1072_v63  ;;  %v579_v41 = vsel %vm576_vm1, %v578_v35, %v574_v38 }
  0xe3   :  { %604 = vst [vmem:[#allocation3 + $0x38] sm:$0xff] %v588_v50  ;;  %v596_v43 = vmul.f32 %v579_v41, %v1079_v4 }
  0xe4   :  { %608 = vst [vmem:[#allocation3 + $0x58] sm:$0xff] %v592_v37 }
  0xe5   :  { %612 = vst [vmem:[#allocation3 + $0x78] sm:$0xff] %v596_v43 }
  0xe6   :  { %625 = dma.vmem_to_hbm [thread:$0]  %s618_s2, 2048, %s620_s10, [#allocation4], %s809_s11, %s809_s11, %s810_s12  }
  0xe7   :  { %806 = dma.done.wait [#allocation4], 2048  }
  0xe8   :  { %807 = vsyncadd [#allocation4], 4294965248 }
  0xe9   :  { %630 = vsyncpa [#allocation4], 1 }

</bundles_post_ra>
